<compile_context>
chip_gen: v7x
topology: tpu7x:2x2x1
jax: 0.10.0
libtpu: 0.0.40
codegen_flags: <defaults>
</compile_context>

<pallas_src>
import functools

import numpy as np
import jax
import jax.numpy as jnp
from jax.experimental import pallas as pl
from jax.experimental.pallas import tpu as pltpu


def _round_up(x: int, m: int) -> int:
    return (x + m - 1) // m * m


def _rdft2_matrix(patch_size: int, channels: int, dtype):
    """Block-diagonal flattened 2-D rDFT matrix, shape (2*C*P*Wf, C*P*P).

    Row layout: [Re(c=0), Re(c=1), ..., Im(c=0), Im(c=1), ...]; within a channel
    block the frequency index is k*Wf + w (w in [0, P//2]).  Column layout:
    channel-major pixels, c*P*P + p*P + q.  For a real patch x (flattened
    row-major into a column), W_big @ x gives Re/Im of numpy/torch rfft2.
    """
    P = patch_size
    Wf = P // 2 + 1
    p = np.arange(P)
    k = np.arange(P)
    w = np.arange(Wf)
    kp = np.outer(p, k)                              # (P, P)   [p, k]
    wq = np.outer(p, w)                              # (P, Wf)  [q, w]
    phase = (kp[:, None, :, None] + wq[None, :, None, :]) * (2.0 * np.pi / P)
    w_re = np.cos(phase).reshape(P * P, P * Wf)      # [pixel, freq]
    w_im = (-np.sin(phase)).reshape(P * P, P * Wf)

    PP, PWf, C = P * P, P * Wf, channels
    big = np.zeros((2 * C * PWf, C * PP), np.float32)
    for c in range(C):
        big[c * PWf:(c + 1) * PWf, c * PP:(c + 1) * PP] = w_re.T
        big[C * PWf + c * PWf:C * PWf + (c + 1) * PWf, c * PP:(c + 1) * PP] = w_im.T
    return jnp.asarray(big, dtype)


def _patch_freq_kernel(d_ref, w_ref, out_ref, *, c_pwf: int, norm: str):
    """Per tile: one MXU matmul (rDFT of all channels) + per-patch norm.

    d_ref  : (C*P*P, TN)      bf16/f32 difference patches, one patch per lane
    w_ref  : (2*C*P*Wf, C*P*P) block-diagonal rDFT matrix ([Re rows; Im rows])
    out_ref: (1, TN)          per-patch frequency-domain norm (lane-dense)
    """
    y = jnp.dot(w_ref[...], d_ref[...], preferred_element_type=jnp.float32)
    if norm == "l1":
        re = y[:c_pwf, :]
        im = y[c_pwf:, :]
        per = jnp.sum(jnp.sqrt(re * re + im * im), axis=0, keepdims=True)
    else:  # "l2"
        per = jnp.sqrt(jnp.sum(y * y, axis=0, keepdims=True))
    out_ref[...] = per


def patch_freq_loss(pred, target, patch_size: int, norm: str, *,
                    tile_patches: int = 2048, compute_dtype=jnp.bfloat16):
    if norm not in ("l1", "l2"):
        raise ValueError("norm type error")
    B, C, H, W = pred.shape
    P = patch_size
    assert H % P == 0 and W % P == 0
    PP = P * P
    PWf = P * (P // 2 + 1)
    nH, nW = H // P, W // P
    N = B * nH * nW
    CPP = C * PP
    CPWf = C * PWf

    # Difference image (FFT is linear) -> (C*P*P, N) patch columns, in compute
    # dtype.  XLA fuses subtract + transpose + cast into one pass over HBM.
    d = (pred - target).reshape(B, C, nH, P, nW, P)
    d = d.transpose(1, 3, 5, 0, 2, 4).reshape(CPP, N).astype(compute_dtype)

    # Large lane-dense tiles; pad patch axis so the grid divides evenly.
    TN = _round_up(min(int(tile_patches), _round_up(N, 128)), 128)
    N_pad = _round_up(N, TN)
    if N_pad != N:
        d = jnp.pad(d, ((0, 0), (0, N_pad - N)))   # zero patches contribute 0

    w_big = _rdft2_matrix(P, C, compute_dtype)

    kernel = functools.partial(_patch_freq_kernel, c_pwf=CPWf, norm=norm)
    per_patch = pl.pallas_call(
        kernel,
        out_shape=jax.ShapeDtypeStruct((1, N_pad), jnp.float32),
        grid=(N_pad // TN,),
        in_specs=[
            pl.BlockSpec((CPP, TN), lambda i: (0, i)),
            pl.BlockSpec((2 * CPWf, CPP), lambda i: (0, 0)),
        ],
        out_specs=pl.BlockSpec((1, TN), lambda i: (0, i)),
        compiler_params=pltpu.CompilerParams(
            dimension_semantics=("parallel",)),
    )(d, w_big)

    # Padded columns are exactly 0; divide by the true patch count.
    return jnp.sum(per_patch) / N


def patch_freq_loss_ref(pred, target, patch_size: int, norm: str):
    """NumPy reference mirroring the PyTorch module exactly."""
    pred = np.asarray(pred, np.float32)
    target = np.asarray(target, np.float32)
    B, C, H, W = pred.shape
    P = patch_size

    def to_patches(img):
        x = img.reshape(B, C, H // P, P, W // P, P)
        x = x.transpose(0, 2, 4, 1, 3, 5)
        return x.reshape(-1, C, P, P)

    diff = np.fft.rfft2(to_patches(pred)) - np.fft.rfft2(to_patches(target))
    mag = np.abs(diff)
    if norm == "l1":
        per = mag.sum(axis=(1, 2, 3))
    else:
        per = np.sqrt((mag * mag).sum(axis=(1, 2, 3)))
    return per.mean()


if __name__ == "__main__":
    key = jax.random.PRNGKey(0)
    k1, k2 = jax.random.split(key)
    B, C, H, W = 2, 3, 32, 32
    patch_size = 8  # 32 patches, patch = 8x8, rfft2 -> (8, 5) bins per channel

    pred = jax.random.normal(k1, (B, C, H, W), dtype=jnp.float32)
    target = jax.random.normal(k2, (B, C, H, W), dtype=jnp.float32)

    for norm in ("l2", "l1"):
        out = jax.block_until_ready(patch_freq_loss(pred, target, patch_size, norm))
        ref = patch_freq_loss_ref(pred, target, patch_size, norm)
        np.testing.assert_allclose(np.asarray(out), ref, rtol=5e-2, atol=1e-3)

    print("KERNEL_OK")
</pallas_src>

<mosaic_0001>
module attributes {stable_mosaic.version = 11 : i64} {
  func.func @_patch_freq_kernel(%arg0: i32, %arg1: memref<192x128xbf16, #tpu.memory_space<vmem>>, %arg2: memref<240x192xbf16, #tpu.memory_space<vmem>>, %arg3: memref<1x128xf32, #tpu.memory_space<vmem>>) attributes {dimension_semantics = [#tpu.dimension_semantics<parallel>], iteration_bounds = array<i64: 1>, scalar_prefetch = 0 : i64, scratch_operands = 0 : i64, tpu.core_type = #tpu.core_type<tc>, window_params = [{transform_indices = @transform_0, window_bounds = array<i64: 192, 128>}, {pipeline_mode = #tpu.pipeline_mode<synchronous>, transform_indices = @transform_1, window_bounds = array<i64: 240, 192>}, {transform_indices = @transform_2, window_bounds = array<i64: 1, 128>}]} {
    %c0 = arith.constant 0 : index
    %c0_0 = arith.constant 0 : index
    %0 = vector.load %arg2[%c0, %c0_0] : memref<240x192xbf16, #tpu.memory_space<vmem>>, vector<240x192xbf16>
    %c0_1 = arith.constant 0 : index
    %c0_2 = arith.constant 0 : index
    %1 = vector.load %arg1[%c0_1, %c0_2] : memref<192x128xbf16, #tpu.memory_space<vmem>>, vector<192x128xbf16>
    %cst = arith.constant dense<0.000000e+00> : vector<240x128xf32>
    %2 = tpu.matmul %0, %1, %cst {dimension_numbers = #tpu.dot_dimension_numbers<[1], [0], [0], [1], [0, 0, 1, 1], [], []>} : vector<240x192xbf16>, vector<192x128xbf16>, vector<240x128xf32> -> vector<240x128xf32>
    %3 = arith.mulf %2, %2 : vector<240x128xf32>
    %cst_3 = arith.constant dense<0.000000e+00> : vector<128xf32>
    %4 = vector.multi_reduction <add>, %3, %cst_3 [0] : vector<240x128xf32> to vector<128xf32>
    %5 = vector.shape_cast %4 : vector<128xf32> to vector<1x128xf32>
    %6 = math.sqrt %5 : vector<1x128xf32>
    %c0_4 = arith.constant 0 : index
    %c0_5 = arith.constant 0 : index
    %7 = vector.load %arg3[%c0_4, %c0_5] : memref<1x128xf32, #tpu.memory_space<vmem>>, vector<1x128xf32>
    tpu.vector_store %arg3[%c0_4, %c0_5], %6 {strides = array<i32>} : memref<1x128xf32, #tpu.memory_space<vmem>>, vector<1x128xf32>,
    return
  }
  func.func @transform_0(%arg0: i32) -> (i32, i32) {
    %c0_i32 = arith.constant 0 : i32
    %c0_i32_0 = arith.constant 0 : i32
    return %c0_i32, %arg0 : i32, i32
  }
  func.func @transform_1(%arg0: i32) -> (i32, i32) {
    %c0_i32 = arith.constant 0 : i32
    %c0_i32_0 = arith.constant 0 : i32
    %c0_i32_1 = arith.constant 0 : i32
    return %c0_i32, %c0_i32_0 : i32, i32
  }
  func.func @transform_2(%arg0: i32) -> (i32, i32) {
    %c0_i32 = arith.constant 0 : i32
    %c0_i32_0 = arith.constant 0 : i32
    return %c0_i32, %arg0 : i32, i32
  }
}

</mosaic_0001>

<bundles_post_ra>
// kernel: tpu_custom_call.1
= control target key start
LH: loop header
LB: loop body
LE: loop exit
PB: predicated region body
PF: predicated region fallthrough
CT: control target
= control target key end

     0   :  { %v726_v1 = vmov 0   ;;  %vm274_vm0 = vcmask 523264   ;;  %s928_s0 = inlined_call_operand.vmem [shape: bf16[192,128], index: 0, kind: input, shape index: {}]   ;;  %s929_s1 = inlined_call_operand.vmem [shape: bf16[240,192], index: 1, kind: input, shape index: {}]   ;;  %s930_s2 = inlined_call_operand.hbm [shape: f32[1,128], index: 2, kind: output, shape index: {}]  }
   0x1   :  { %v643_v0 = vld [vmem:[%s928_s0] sm:$0xff]   ;;  %320 = vmatprep.subr.bf16.mxu0 %v726_v1  ;;  %617 = vmatprep.subr.bf16.mxu1 %v726_v1  ;;  %v644_v2 = vld [vmem:[%s928_s0 + $0x8] sm:$0xff]   ;;  %v645_v3 = vld [vmem:[%s928_s0 + $0x10] sm:$0xff]  }
   0x2   :  { %321 = vmatpush1.bf16.msra.mxu0 %v643_v0  ;;  %629 = vmatpush1.bf16.msra.mxu1 %v643_v0  ;;  %v646_v4 = vld [vmem:[%s928_s0 + $0x18] sm:$0xff]   ;;  %v657_v5 = vld [vmem:[%s929_s1 + $0x4] ss:$8 sps:$4 sm:$0xff]   ;;  %v649_v9 = vld [vmem:[%s928_s0 + $0x30] sm:$0xff]  }
   0x3   :  { %322 = vmatprep.subr.bf16.mxu0 %v726_v1  ;;  %618 = vmatprep.subr.bf16.mxu1 %v726_v1  ;;  %v647_v6 = vld [vmem:[%s928_s0 + $0x20] sm:$0xff]   ;;  %v648_v7 = vld [vmem:[%s928_s0 + $0x28] sm:$0xff]   ;;  %v650_v10 = vld [vmem:[%s928_s0 + $0x38] sm:$0xff]  }
   0x4   :  { %602 = vmatprep.mubr.msk.bf16.mxu0 %vm274_vm0, %v657_v5  ;;  %v672_v8 = vld [vmem:[%s929_s1 + $0x84] ss:$8 sps:$4 sm:$0xff]  }
   0x5   :  { %610 = vmatprep.mubr.msk.bf16.mxu1 %vm274_vm0, %v672_v8  ;;  %v651_v11 = vld [vmem:[%s928_s0 + $0x40] sm:$0xff]  }
   0x6   :  { %323 = vmatpush1.bf16.msra.mxu0 %v644_v2  ;;  %630 = vmatpush1.bf16.msra.mxu1 %v644_v2 }
   0x7   :  { %324 = vmatprep.subr.bf16.mxu0 %v726_v1  ;;  %619 = vmatprep.subr.bf16.mxu1 %v726_v1 }
   0xa   :  { %325 = vmatpush1.bf16.msra.mxu0 %v645_v3  ;;  %631 = vmatpush1.bf16.msra.mxu1 %v645_v3 }
   0xb   :  { %326 = vmatprep.subr.bf16.mxu0 %v726_v1  ;;  %620 = vmatprep.subr.bf16.mxu1 %v726_v1 }
   0xe   :  { %327 = vmatpush1.bf16.msra.mxu0 %v646_v4  ;;  %632 = vmatpush1.bf16.msra.mxu1 %v646_v4 }
   0xf   :  { %328 = vmatprep.subr.bf16.mxu0 %v726_v1  ;;  %621 = vmatprep.subr.bf16.mxu1 %v726_v1 }
  0x12   :  { %329 = vmatpush1.bf16.msra.mxu0 %v647_v6  ;;  %633 = vmatpush1.bf16.msra.mxu1 %v647_v6 }
  0x13   :  { %330 = vmatprep.subr.bf16.mxu0 %v726_v1  ;;  %622 = vmatprep.subr.bf16.mxu1 %v726_v1 }
  0x16   :  { %331 = vmatpush1.bf16.msra.mxu0 %v648_v7  ;;  %634 = vmatpush1.bf16.msra.mxu1 %v648_v7 }
  0x17   :  { %332 = vmatprep.subr.bf16.mxu0 %v726_v1  ;;  %623 = vmatprep.subr.bf16.mxu1 %v726_v1 }
  0x1a   :  { %333 = vmatpush1.bf16.msra.mxu0 %v649_v9  ;;  %635 = vmatpush1.bf16.msra.mxu1 %v649_v9 }
  0x1b   :  { %334 = vmatprep.subr.bf16.mxu0 %v726_v1  ;;  %624 = vmatprep.subr.bf16.mxu1 %v726_v1 }
  0x1e   :  { %335 = vmatpush1.bf16.msra.mxu0 %v650_v10  ;;  %636 = vmatpush1.bf16.msra.mxu1 %v650_v10 }
  0x1f   :  { %336 = vmatprep.subr.bf16.mxu0 %v726_v1  ;;  %625 = vmatprep.subr.bf16.mxu1 %v726_v1 }
  0x20   :  { %7 = vsyncpa [#allocation3], 0  ;;  %v652_v12 = vld [vmem:[%s928_s0 + $0x48] sm:$0xff]   ;;  %v653_v13 = vld [vmem:[%s928_s0 + $0x50] sm:$0xff]  }
  0x21   :  { %v654_v14 = vld [vmem:[%s928_s0 + $0x58] sm:$0xff]   ;;  %v655_v15 = vld [vmem:[%s929_s1] ss:$8 sps:$4 sm:$0xff]   ;;  %v661_v21 = vld [vmem:[%s929_s1 + $0x24] ss:$8 sps:$4 sm:$0xff]  }
  0x22   :  { %337 = vmatpush1.bf16.msra.mxu0 %v651_v11  ;;  %637 = vmatpush1.bf16.msra.mxu1 %v651_v11  ;;  %v670_v16 = vld [vmem:[%s929_s1 + $0x80] ss:$8 sps:$4 sm:$0xff]   ;;  %v658_v17 = vld [vmem:[%s929_s1 + $0x14] ss:$8 sps:$4 sm:$0xff]   ;;  %v660_v19 = vld [vmem:[%s929_s1 + $0x10] ss:$8 sps:$4 sm:$0xff]  }
  0x23   :  { %338 = vmatprep.subr.bf16.mxu0 %v726_v1  ;;  %626 = vmatprep.subr.bf16.mxu1 %v726_v1  ;;  %v676_v18 = vld [vmem:[%s929_s1 + $0x94] ss:$8 sps:$4 sm:$0xff]   ;;  %v678_v20 = vld [vmem:[%s929_s1 + $0x90] ss:$8 sps:$4 sm:$0xff]   ;;  %v682_v22 = vld [vmem:[%s929_s1 + $0xa4] ss:$8 sps:$4 sm:$0xff]  }
  0x24   :  { %v663_v23 = vld [vmem:[%s929_s1 + $0x20] ss:$8 sps:$4 sm:$0xff]   ;;  %v664_v25 = vld [vmem:[%s929_s1 + $0x34] ss:$8 sps:$4 sm:$0xff]   ;;  %v666_v27 = vld [vmem:[%s929_s1 + $0x30] ss:$8 sps:$4 sm:$0xff]  }
  0x25   :  { %v684_v24 = vld [vmem:[%s929_s1 + $0xa0] ss:$8 sps:$4 sm:$0xff]   ;;  %v688_v26 = vld [vmem:[%s929_s1 + $0xb4] ss:$8 sps:$4 sm:$0xff]   ;;  %v690_v28 = vld [vmem:[%s929_s1 + $0xb0] ss:$8 sps:$4 sm:$0xff]  }
  0x26   :  { %339 = vmatpush1.bf16.msra.mxu0 %v652_v12  ;;  %638 = vmatpush1.bf16.msra.mxu1 %v652_v12  ;;  %v667_v29 = vld [vmem:[%s929_s1 + $0x44] ss:$8 sps:$4 sm:$0xff]   ;;  %v669_v31 = vld [vmem:[%s929_s1 + $0x40] ss:$8 sps:$4 sm:$0xff]   ;;  %v673_v33 = vld [vmem:[%s929_s1 + $0x54] ss:$8 sps:$4 sm:$0xff]  }
  0x27   :  { %340 = vmatprep.subr.bf16.mxu0 %v726_v1  ;;  %627 = vmatprep.subr.bf16.mxu1 %v726_v1  ;;  %v691_v30 = vld [vmem:[%s929_s1 + $0xc4] ss:$8 sps:$4 sm:$0xff]   ;;  %v693_v32 = vld [vmem:[%s929_s1 + $0xc0] ss:$8 sps:$4 sm:$0xff]   ;;  %v694_v34 = vld [vmem:[%s929_s1 + $0xd4] ss:$8 sps:$4 sm:$0xff]  }
  0x28   :  { %v675_v35 = vld [vmem:[%s929_s1 + $0x50] ss:$8 sps:$4 sm:$0xff]   ;;  %v679_v37 = vld [vmem:[%s929_s1 + $0x64] ss:$8 sps:$4 sm:$0xff]   ;;  %v681_v39 = vld [vmem:[%s929_s1 + $0x60] ss:$8 sps:$4 sm:$0xff]  }
  0x29   :  { %v696_v36 = vld [vmem:[%s929_s1 + $0xd0] ss:$8 sps:$4 sm:$0xff]   ;;  %v697_v38 = vld [vmem:[%s929_s1 + $0xe4] ss:$8 sps:$4 sm:$0xff]   ;;  %v699_v40 = vld [vmem:[%s929_s1 + $0xe0] ss:$8 sps:$4 sm:$0xff]  }
  0x2a   :  { %341 = vmatpush1.bf16.msra.mxu0 %v653_v13  ;;  %639 = vmatpush1.bf16.msra.mxu1 %v653_v13  ;;  %v685_v41 = vld [vmem:[%s929_s1 + $0x74] ss:$8 sps:$4 sm:$0xff]   ;;  %v687_v42 = vld [vmem:[%s929_s1 + $0x70] ss:$8 sps:$4 sm:$0xff]   ;;  %s727_s1 = smov [#allocation2]  }
  0x2b   :  { %342 = vmatprep.subr.bf16.mxu0 %v726_v1  ;;  %628 = vmatprep.subr.bf16.mxu1 %v726_v1  ;;  %s552_s7 = sshll.u32 %s727_s1, 4  ;;  %s553_s7 = int_to_ptr.vmem [resolvable:$true] %s552_s7 }
  0x2c   :  { %s702_s8 = scalar_lea.vmem %s553_s7, 16  ;;  %s706_s9 = scalar_lea.vmem %s553_s7, 32 }
  0x2d   :  { %p703_p0 = scmp.ne.s32.totalorder %s553_s7, %s702_s8  ;;  %p707_p1 = scmp.lt.s32.totalorder %s553_s7, %s553_s7 }
  0x2e   :  { %343 = vmatpush1.bf16.msra.mxu0 %v654_v14  ;;  %640 = vmatpush1.bf16.msra.mxu1 %v654_v14  ;;  %p708_p2 = scmp.lt.s32.totalorder %s706_s9, %s702_s8 }
  0x30   :  { %p709_p3 = por %p708_p2, %p707_p1 }
  0x31   :  { %353 = vmatmul.mubr.bf16.vlgmr.msra.gmra.mrb[0].mxu0 %v655_v15  ;;  %417 = vmatmul.mubr.bf16.vlgmr.msra.gmra.mrb[0].mxu1 %v670_v16 }
  0x32   :  { %603 = vmatprep.mubr.msk.bf16.mxu0 %vm274_vm0, %v658_v17  ;;  %611 = vmatprep.mubr.msk.bf16.mxu1 %vm274_vm0, %v676_v18  ;;  %p710_p4 = pnand %p709_p3, %p703_p0 }
  0x39   :  { %361 = vmatmul.mubr.bf16.gmra.mrb[4].mxu0 %v660_v19  ;;  %425 = vmatmul.mubr.bf16.gmra.mrb[4].mxu1 %v678_v20 }
  0x3a   :  { %604 = vmatprep.mubr.msk.bf16.mxu0 %vm274_vm0, %v661_v21  ;;  %612 = vmatprep.mubr.msk.bf16.mxu1 %vm274_vm0, %v682_v22 }
  0x41   :  { %369 = vmatmul.mubr.bf16.gmra.mrb[8].mxu0 %v663_v23  ;;  %433 = vmatmul.mubr.bf16.gmra.mrb[8].mxu1 %v684_v24 }
  0x42   :  { %605 = vmatprep.mubr.msk.bf16.mxu0 %vm274_vm0, %v664_v25  ;;  %613 = vmatprep.mubr.msk.bf16.mxu1 %vm274_vm0, %v688_v26 }
  0x49   :  { %377 = vmatmul.mubr.bf16.gmra.mrb[12].mxu0 %v666_v27  ;;  %441 = vmatmul.mubr.bf16.gmra.mrb[12].mxu1 %v690_v28 }
  0x4a   :  { %606 = vmatprep.mubr.msk.bf16.mxu0 %vm274_vm0, %v667_v29  ;;  %614 = vmatprep.mubr.msk.bf16.mxu1 %vm274_vm0, %v691_v30 }
  0x51   :  { %385 = vmatmul.mubr.bf16.gmra.mrb[16].mxu0 %v669_v31  ;;  %449 = vmatmul.mubr.bf16.gmra.mrb[16].mxu1 %v693_v32 }
  0x52   :  { %607 = vmatprep.mubr.msk.bf16.mxu0 %vm274_vm0, %v673_v33  ;;  %615 = vmatprep.mubr.msk.bf16.mxu1 %vm274_vm0, %v694_v34 }
  0x59   :  { %393 = vmatmul.mubr.bf16.gmra.mrb[20].mxu0 %v675_v35  ;;  %457 = vmatmul.mubr.bf16.gmra.mrb[20].mxu1 %v696_v36 }
  0x5a   :  { %608 = vmatprep.mubr.msk.bf16.mxu0 %vm274_vm0, %v679_v37  ;;  %616 = vmatprep.mubr.msk.bf16.mxu1 %vm274_vm0, %v697_v38 }
  0x61   :  { %401 = vmatmul.mubr.bf16.gmra.mrb[24].mxu0 %v681_v39  ;;  %465 = vmatmul.mubr.bf16.gmra.mrb[24].mxu1 %v699_v40 }
  0x62   :  { %609 = vmatprep.mubr.msk.bf16.mxu0 %vm274_vm0, %v685_v41 }
  0x69   :  { %409 = vmatmul.mubr.bf16.gmra.mrb[28].mxu0 %v687_v42 }
 0x104   :  { %v354_v43 = vpop.f32.mrb[0].mxu0  ;;  %v884_v44 = vpop.f32.mrb[0].mxu1 }
 0x105   :  { %v356_v45 = vpop.f32.mrb[1].mxu0  ;;  %v420_v46 = vpop.f32.mrb[1].mxu1  ;;  %v473_v49 = vmul.f32 %v354_v43, %v354_v43 }
 0x106   :  { %v357_v47 = vpop.f32.mrb[2].mxu0  ;;  %v886_v48 = vpop.f32.mrb[2].mxu1 }
 0x107   :  { %v474_v50 = vmul.f32 %v357_v47, %v357_v47  ;;  %v359_v51 = vpop.f32.mrb[3].mxu0  ;;  %v423_v52 = vpop.f32.mrb[3].mxu1 }
 0x109   :  { %v503_v53 = vadd.f32 %v474_v50, %v473_v49 }
 0x10c   :  { %v362_v54 = vpop.f32.mrb[4].mxu0  ;;  %v888_v55 = vpop.f32.mrb[4].mxu1 }
 0x10d   :  { %v475_v56 = vmul.f32 %v362_v54, %v362_v54  ;;  %v364_v57 = vpop.f32.mrb[5].mxu0  ;;  %v428_v58 = vpop.f32.mrb[5].mxu1 }
 0x10e   :  { %v365_v59 = vpop.f32.mrb[6].mxu0  ;;  %v890_v60 = vpop.f32.mrb[6].mxu1 }
 0x10f   :  { %v504_v61 = vadd.f32 %v503_v53, %v475_v56  ;;  %v476_v62 = vmul.f32 %v365_v59, %v365_v59  ;;  %v367_v63 = vpop.f32.mrb[7].mxu0  ;;  %v431_v0 = vpop.f32.mrb[7].mxu1 }
 0x111   :  { %v505_v1 = vadd.f32 %v504_v61, %v476_v62 }
 0x114   :  { %v370_v2 = vpop.f32.mrb[8].mxu0  ;;  %v892_v3 = vpop.f32.mrb[8].mxu1 }
 0x115   :  { %v477_v4 = vmul.f32 %v370_v2, %v370_v2  ;;  %v372_v5 = vpop.f32.mrb[9].mxu0  ;;  %v436_v6 = vpop.f32.mrb[9].mxu1 }
 0x116   :  { %v373_v7 = vpop.f32.mrb[10].mxu0  ;;  %v894_v8 = vpop.f32.mrb[10].mxu1 }
 0x117   :  { %v506_v9 = vadd.f32 %v505_v1, %v477_v4  ;;  %v478_v10 = vmul.f32 %v373_v7, %v373_v7  ;;  %v375_v11 = vpop.f32.mrb[11].mxu0  ;;  %v439_v12 = vpop.f32.mrb[11].mxu1 }
 0x118   :  { %v489_v11 = vmul.f32 %v884_v44, %v884_v44  ;;  %v494_v44 = vmul.f32 %v894_v8, %v894_v8 }
 0x119   :  { %v507_v13 = vadd.f32 %v506_v9, %v478_v10 }
 0x11c   :  { %v378_v14 = vpop.f32.mrb[12].mxu0  ;;  %v896_v15 = vpop.f32.mrb[12].mxu1 }
 0x11d   :  { %v479_v16 = vmul.f32 %v378_v14, %v378_v14  ;;  %v380_v17 = vpop.f32.mrb[13].mxu0  ;;  %v444_v18 = vpop.f32.mrb[13].mxu1 }
 0x11e   :  { %v381_v19 = vpop.f32.mrb[14].mxu0  ;;  %v898_v20 = vpop.f32.mrb[14].mxu1  ;;  %v492_v18 = vmul.f32 %v890_v60, %v890_v60 }
 0x11f   :  { %v508_v21 = vadd.f32 %v507_v13, %v479_v16  ;;  %v480_v22 = vmul.f32 %v381_v19, %v381_v19  ;;  %v383_v23 = vpop.f32.mrb[15].mxu0  ;;  %v447_v24 = vpop.f32.mrb[15].mxu1  ;;  %v490_v13 = vmul.f32 %v886_v48, %v886_v48  ;;  %v491_v16 = vmul.f32 %v888_v55, %v888_v55 }
 0x120   :  { %v495_v48 = vmul.f32 %v896_v15, %v896_v15  ;;  %v496_v55 = vmul.f32 %v898_v20, %v898_v20 }
 0x121   :  { %v509_v25 = vadd.f32 %v508_v21, %v480_v22  ;;  %v493_v21 = vmul.f32 %v892_v3, %v892_v3 }
 0x124   :  { %v386_v26 = vpop.f32.mrb[16].mxu0  ;;  %v450_v27 = vpop.f32.mrb[16].mxu1 }
 0x125   :  { %v481_v28 = vmul.f32 %v386_v26, %v386_v26  ;;  %v388_v29 = vpop.f32.mrb[17].mxu0  ;;  %v452_v30 = vpop.f32.mrb[17].mxu1 }
 0x126   :  { %v389_v31 = vpop.f32.mrb[18].mxu0  ;;  %v453_v32 = vpop.f32.mrb[18].mxu1 }
 0x127   :  { %v510_v33 = vadd.f32 %v509_v25, %v481_v28  ;;  %v482_v34 = vmul.f32 %v389_v31, %v389_v31  ;;  %v391_v35 = vpop.f32.mrb[19].mxu0  ;;  %v455_v36 = vpop.f32.mrb[19].mxu1  ;;  %v497_v28 = vmul.f32 %v450_v27, %v450_v27  ;;  %v498_v29 = vmul.f32 %v453_v32, %v453_v32 }
 0x129   :  { %v511_v37 = vadd.f32 %v510_v33, %v482_v34 }
 0x12c   :  { %v394_v38 = vpop.f32.mrb[20].mxu0  ;;  %v458_v39 = vpop.f32.mrb[20].mxu1 }
 0x12d   :  { %v483_v40 = vmul.f32 %v394_v38, %v394_v38  ;;  %v396_v41 = vpop.f32.mrb[21].mxu0  ;;  %v460_v42 = vpop.f32.mrb[21].mxu1  ;;  %v499_v31 = vmul.f32 %v458_v39, %v458_v39 }
 0x12e   :  { %v397_v43 = vpop.f32.mrb[22].mxu0  ;;  %v461_v45 = vpop.f32.mrb[22].mxu1 }
 0x12f   :  { %v512_v46 = vadd.f32 %v511_v37, %v483_v40  ;;  %v484_v47 = vmul.f32 %v397_v43, %v397_v43  ;;  %v399_v49 = vpop.f32.mrb[23].mxu0  ;;  %v463_v50 = vpop.f32.mrb[23].mxu1  ;;  %v500_v33 = vmul.f32 %v461_v45, %v461_v45 }
 0x131   :  { %v513_v51 = vadd.f32 %v512_v46, %v484_v47 }
 0x134   :  { %v402_v52 = vpop.f32.mrb[24].mxu0  ;;  %v466_v53 = vpop.f32.mrb[24].mxu1 }
 0x135   :  { %v485_v54 = vmul.f32 %v402_v52, %v402_v52  ;;  %v404_v56 = vpop.f32.mrb[25].mxu0  ;;  %v468_v57 = vpop.f32.mrb[25].mxu1  ;;  %v501_v34 = vmul.f32 %v466_v53, %v466_v53 }
 0x136   :  { %v405_v58 = vpop.f32.mrb[26].mxu0  ;;  %v469_v59 = vpop.f32.mrb[26].mxu1 }
 0x137   :  { %v514_v61 = vadd.f32 %v513_v51, %v485_v54  ;;  %v486_v62 = vmul.f32 %v405_v58, %v405_v58  ;;  %v407_v63 = vpop.f32.mrb[27].mxu0  ;;  %v471_v0 = vpop.f32.mrb[27].mxu1  ;;  %v502_v36 = vmul.f32 %v469_v59, %v469_v59 }
 0x139   :  { %v515_v1 = vadd.f32 %v514_v61, %v486_v62 }
 0x13c   :  { %v410_v2 = vpop.f32.mrb[28].mxu0 }
 0x13d   :  { %v487_v4 = vmul.f32 %v410_v2, %v410_v2  ;;  %v412_v5 = vpop.f32.mrb[29].mxu0 }
 0x13e   :  { %v413_v6 = vpop.f32.mrb[30].mxu0 }
 0x13f   :  { %v516_v7 = vadd.f32 %v515_v1, %v487_v4  ;;  %v488_v9 = vmul.f32 %v413_v6, %v413_v6  ;;  %v415_v10 = vpop.f32.mrb[31].mxu0 }
 0x141   :  { %v517_v12 = vadd.f32 %v516_v7, %v488_v9 }
 0x143   :  { %v518_v14 = vadd.f32 %v517_v12, %v489_v11 }
 0x145   :  { %v519_v17 = vadd.f32 %v518_v14, %v490_v13 }
 0x147   :  { %v520_v19 = vadd.f32 %v519_v17, %v491_v16 }
 0x149   :  { %v521_v22 = vadd.f32 %v520_v19, %v492_v18 }
 0x14b   :  { %v522_v23 = vadd.f32 %v521_v22, %v493_v21 }
 0x14d   :  { %v523_v24 = vadd.f32 %v522_v23, %v494_v44 }
 0x14f   :  { %v524_v25 = vadd.f32 %v523_v24, %v495_v48 }
 0x151   :  { %v525_v26 = vadd.f32 %v524_v25, %v496_v55 }
 0x153   :  { %v526_v60 = vadd.f32 %v525_v26, %v497_v28 }
 0x155   :  { %v527_v30 = vadd.f32 %v526_v60, %v498_v29 }
 0x157   :  { %v528_v3 = vadd.f32 %v527_v30, %v499_v31 }
 0x159   :  { %v529_v35 = vadd.f32 %v528_v3, %v500_v33 }
 0x15b   :  { %v530_v8 = vadd.f32 %v529_v35, %v501_v34 }
 0x15d   :  { %v531_v37 = vadd.f32 %v530_v8, %v502_v36 }
 0x15f   :  { %v532_v38 = vrot.slane %v531_v37, 4 }
 0x161   :  { %v533_v15 = vadd.f32 %v532_v38, %v531_v37 }
 0x163   :  { %v534_v40 = vrot.slane %v533_v15, 2 }
 0x165   :  { %v535_v41 = vadd.f32 %v534_v40, %v533_v15 }
 0x167   :  { %v536_v42 = vrot.slane %v535_v41, 1 }
 0x169   :  { %v537_v20 = vadd.f32 %v536_v42, %v535_v41 }
 0x16b   :  { %700 = vrsqrt.f32 %v537_v20  ;;  %vm540_vm1 = vcmp.eq.f32.partialorder %v537_v20, inf  ;;  %v543_v32 = vand.u32 2147483648, %v537_v20  ;;  %vm542_vm2 = vcmp.eq.f32.partialorder %v537_v20, 0.0 }
 0x175   :  { %v701_v43 = vpop.eup %700 }
 0x176   :  { %v539_v27 = vmul.f32 %v701_v43, %v537_v20 }
 0x178   :  { %v541_v39 = vsel %vm540_vm1, %v537_v20, %v539_v27 }
 0x179   :  { %v544_v45 = vsel %vm542_vm2, %v543_v32, %v541_v39 }
 0x17a   :  { %545 = vst [vmem:[#allocation2] sm:$0x1] %v544_v45 }
 0x17b   :  { %713 = shalt.err (!%p710_p4)
}
 0x17c   :  { %s714_s12 = scalar_lea.hbm %s930_s2, 16 }
 0x17d   :  { %p715_p5 = scmp.ne.s32.totalorder %s930_s2, %s714_s12  ;;  %p718_p6 = scmp.lt.u32.totalorder %s714_s12, %s930_s2 }
 0x17f   :  { %p720_p7 = pnand %p718_p6, %p715_p5 }
 0x181   :  { %723 = shalt.err (!%p720_p7)
}
 0x182   :  { %555 = dma.vmem_to_hbm [thread:$0]  %s553_s7, 16, %s930_s2, [#allocation3]  }
 0x183   :  { %724 = dma.done.wait [#allocation3], 16  }
 0x184   :  { %725 = vsyncadd [#allocation3], 4294967280 }
 0x185   :  { %559 = vsyncpa [#allocation3], 1 }

</bundles_post_ra>
